<compile_context>
chip_gen: v6e
topology: v6e:2x2x1
jax: 0.10.0
libtpu: 0.0.40
codegen_flags: <defaults>
</compile_context>

<pallas_src>
import jax
import jax.numpy as jnp
from jax.experimental import pallas as pl
from jax.experimental.pallas import tpu as pltpu

IN_FEATURES = 28 * 28   # 784 (multiple of 8 -> valid sublane block size)
HIDDEN = 128
OUT_FEATURES = 10
N_PAD = 128             # fc2 outputs padded to lane-dense 128


def _cdiv(a, b):
    return (a + b - 1) // b


def _round_up(n, m):
    return ((n + m - 1) // m) * m


def mlp_kernel(x_ref, w1_ref, b1_ref, w2_ref, b2_ref, o_ref):
    # In-kernel f32 -> bf16 cast of the activation tile (VPU work hidden under
    # the DMA/MXU slack); avoids a separate padded bf16 copy of x in HBM.
    x = x_ref[...].astype(jnp.bfloat16)
    # fc1: (tm, 784) bf16 @ (784, 128) bf16 -> f32 accumulate on the MXU
    h = jnp.dot(x, w1_ref[...], preferred_element_type=jnp.float32)
    h = jnp.maximum(h + b1_ref[...], 0.0)                    # bias + ReLU (VPU)
    # fc2: (tm, 128) bf16 @ (128, 128) bf16 -> f32 accumulate
    out = jnp.dot(h.astype(jnp.bfloat16), w2_ref[...],
                  preferred_element_type=jnp.float32)
    o_ref[...] = (out + b2_ref[...]).astype(o_ref.dtype)


def prepare_params(w1, b1, w2, b2):
    """One-time parameter prep (hoisted out of the forward path).

    w1: (784, 128), b1: (128,), w2: (128, 10), b2: (10,) in (in, out) layout.
    Returns bf16 weights (fc2 padded to 128 lane-dense outputs) + f32 biases.
    """
    w1_p = w1.astype(jnp.bfloat16)                              # (784, 128)
    b1_p = b1.reshape(1, HIDDEN).astype(jnp.float32)            # (1, 128)
    w2_p = jnp.zeros((HIDDEN, N_PAD), jnp.bfloat16)
    w2_p = w2_p.at[:, :OUT_FEATURES].set(w2.astype(jnp.bfloat16))
    b2_p = jnp.zeros((1, N_PAD), jnp.float32)
    b2_p = b2_p.at[0, :OUT_FEATURES].set(b2.astype(jnp.float32))
    return w1_p, b1_p, w2_p, b2_p


def _choose_tm(B, tm_max):
    # Biggest tile that fits, but try to keep >= 2 grid steps so v7x's two
    # TensorCores both get work on the "parallel" batch axis.
    tm = min(tm_max, _round_up(_cdiv(B, 2), 8))
    return max(tm, 8)


def net_forward(x_nchw, w1_p, b1_p, w2_p, b2_p, *, tm_max=512):
    """Forward pass of Net using pre-prepared params (see prepare_params).

    x_nchw: (B, 1, 28, 28) float32 (NCHW, like PyTorch).
    Returns logits (B, 10) float32.
    """
    B = x_nchw.shape[0]
    x = x_nchw.reshape(B, IN_FEATURES)          # x.view(-1, 784); no pad, no copy

    tm = _choose_tm(B, tm_max)
    grid = (_cdiv(B, tm),)                       # partial edge block is masked

    flops = 2 * B * (IN_FEATURES * HIDDEN + HIDDEN * N_PAD)
    bytes_accessed = (x.size * 4 + w1_p.size * 2 + w2_p.size * 2
                      + b1_p.size * 4 + b2_p.size * 4 + B * N_PAD * 4)

    out = pl.pallas_call(
        mlp_kernel,
        out_shape=jax.ShapeDtypeStruct((B, N_PAD), jnp.float32),
        grid=grid,
        in_specs=[
            # x tile at natural width (last dim == full array dim -> legal).
            pl.BlockSpec((tm, IN_FEATURES), lambda i: (i, 0)),
            pl.BlockSpec((IN_FEATURES, HIDDEN), lambda i: (0, 0)),  # w1 resident
            pl.BlockSpec((1, HIDDEN), lambda i: (0, 0)),            # b1
            pl.BlockSpec((HIDDEN, N_PAD), lambda i: (0, 0)),        # w2 resident
            pl.BlockSpec((1, N_PAD), lambda i: (0, 0)),             # b2
        ],
        out_specs=pl.BlockSpec((tm, N_PAD), lambda i: (i, 0)),
        compiler_params=pltpu.CompilerParams(
            dimension_semantics=("parallel",),        # v7x: shard over 2 TCs
            vmem_limit_bytes=32 * 1024 * 1024,        # safe on v7x's 64 MiB VMEM
        ),
        cost_estimate=pl.CostEstimate(
            flops=flops, transcendentals=0, bytes_accessed=bytes_accessed),
    )(x, w1_p, b1_p, w2_p, b2_p)

    # Padded output columns (and any masked edge rows) are never exposed.
    return out[:, :OUT_FEATURES]


def init_params(key):
    """Deterministic init mimicking torch.nn.Linear (uniform +/- 1/sqrt(fan_in))."""
    k1, k2, k3, k4 = jax.random.split(key, 4)
    bound1 = 1.0 / jnp.sqrt(IN_FEATURES)
    bound2 = 1.0 / jnp.sqrt(HIDDEN)
    # stored as (in, out) so the kernel computes x @ W (matches y = x @ W_t.T)
    w1 = jax.random.uniform(k1, (IN_FEATURES, HIDDEN), jnp.float32, -bound1, bound1)
    b1 = jax.random.uniform(k2, (HIDDEN,), jnp.float32, -bound1, bound1)
    w2 = jax.random.uniform(k3, (HIDDEN, OUT_FEATURES), jnp.float32, -bound2, bound2)
    b2 = jax.random.uniform(k4, (OUT_FEATURES,), jnp.float32, -bound2, bound2)
    return w1, b1, w2, b2


if __name__ == "__main__":
    key = jax.random.PRNGKey(0)
    kx, kp = jax.random.split(key)

    B = 2
    x = jax.random.normal(kx, (B, 1, 28, 28), jnp.float32)   # NCHW like PyTorch
    w1, b1, w2, b2 = init_params(kp)

    # One-time parameter prep (would be done at model-load time in practice).
    w1_p, b1_p, w2_p, b2_p = prepare_params(w1, b1, w2, b2)

    logits = net_forward(x, w1_p, b1_p, w2_p, b2_p)
    logits = jax.block_until_ready(logits)
    assert logits.shape == (B, 10)

    # Reference 1: same bf16-quantized operands, f32 math (tight kernel check)
    x_flat = x.reshape(B, -1)
    xb = x_flat.astype(jnp.bfloat16).astype(jnp.float32)
    w1b = w1.astype(jnp.bfloat16).astype(jnp.float32)
    w2b = w2.astype(jnp.bfloat16).astype(jnp.float32)
    h_ref = jnp.maximum(xb @ w1b + b1, 0.0)
    ref_bf16 = h_ref.astype(jnp.bfloat16).astype(jnp.float32) @ w2b + b2
    assert jnp.allclose(logits, ref_bf16, atol=2e-3, rtol=2e-3)

    # Reference 2: pure f32 forward (loose check of overall semantics)
    ref_f32 = jnp.maximum(x_flat @ w1 + b1, 0.0) @ w2 + b2
    assert jnp.allclose(logits, ref_f32, atol=1e-1, rtol=1e-1)

    print("KERNEL_OK")
</pallas_src>

<mosaic_0001>
module attributes {stable_mosaic.version = 11 : i64} {
  func.func @mlp_kernel(%arg0: i32, %arg1: memref<8x784xf32, #tpu.memory_space<vmem>>, %arg2: memref<784x128xbf16, #tpu.memory_space<vmem>>, %arg3: memref<1x128xf32, #tpu.memory_space<vmem>>, %arg4: memref<128x128xbf16, #tpu.memory_space<vmem>>, %arg5: memref<1x128xf32, #tpu.memory_space<vmem>>, %arg6: memref<8x128xf32, #tpu.memory_space<vmem>>) attributes {dimension_semantics = [#tpu.dimension_semantics<parallel>], iteration_bounds = array<i64: 1>, scalar_prefetch = 0 : i64, scratch_operands = 0 : i64, tpu.core_type = #tpu.core_type<tc>, window_params = [{transform_indices = @transform_0, window_bounds = array<i64: 8, 784>}, {pipeline_mode = #tpu.pipeline_mode<synchronous>, transform_indices = @transform_1, window_bounds = array<i64: 784, 128>}, {pipeline_mode = #tpu.pipeline_mode<synchronous>, transform_indices = @transform_2, window_bounds = array<i64: 1, 128>}, {pipeline_mode = #tpu.pipeline_mode<synchronous>, transform_indices = @transform_3, window_bounds = array<i64: 128, 128>}, {pipeline_mode = #tpu.pipeline_mode<synchronous>, transform_indices = @transform_4, window_bounds = array<i64: 1, 128>}, {transform_indices = @transform_5, window_bounds = array<i64: 8, 128>}]} {
    %c0 = arith.constant 0 : index
    %c0_0 = arith.constant 0 : index
    %0 = vector.load %arg1[%c0, %c0_0] : memref<8x784xf32, #tpu.memory_space<vmem>>, vector<8x784xf32>
    %1 = arith.truncf %0 : vector<8x784xf32> to vector<8x784xbf16>
    %c0_1 = arith.constant 0 : index
    %c0_2 = arith.constant 0 : index
    %2 = vector.load %arg2[%c0_1, %c0_2] : memref<784x128xbf16, #tpu.memory_space<vmem>>, vector<784x128xbf16>
    %cst = arith.constant dense<0.000000e+00> : vector<8x128xf32>
    %3 = tpu.matmul %1, %2, %cst {dimension_numbers = #tpu.dot_dimension_numbers<[1], [0], [0], [1], [0, 0, 1, 1], [], []>} : vector<8x784xbf16>, vector<784x128xbf16>, vector<8x128xf32> -> vector<8x128xf32>
    %c0_3 = arith.constant 0 : index
    %c0_4 = arith.constant 0 : index
    %4 = vector.load %arg3[%c0_3, %c0_4] : memref<1x128xf32, #tpu.memory_space<vmem>>, vector<1x128xf32>
    %5 = vector.broadcast %4 : vector<1x128xf32> to vector<8x128xf32>
    %6 = arith.addf %3, %5 : vector<8x128xf32>
    %cst_5 = arith.constant 0.000000e+00 : f32
    %7 = vector.broadcast %cst_5 : f32 to vector<8x128xf32>
    %8 = arith.maximumf %6, %7 : vector<8x128xf32>
    %9 = arith.truncf %8 : vector<8x128xf32> to vector<8x128xbf16>
    %c0_6 = arith.constant 0 : index
    %c0_7 = arith.constant 0 : index
    %10 = vector.load %arg4[%c0_6, %c0_7] : memref<128x128xbf16, #tpu.memory_space<vmem>>, vector<128x128xbf16>
    %cst_8 = arith.constant dense<0.000000e+00> : vector<8x128xf32>
    %11 = tpu.matmul %9, %10, %cst_8 {dimension_numbers = #tpu.dot_dimension_numbers<[1], [0], [0], [1], [0, 0, 1, 1], [], []>} : vector<8x128xbf16>, vector<128x128xbf16>, vector<8x128xf32> -> vector<8x128xf32>
    %c0_9 = arith.constant 0 : index
    %c0_10 = arith.constant 0 : index
    %12 = vector.load %arg5[%c0_9, %c0_10] : memref<1x128xf32, #tpu.memory_space<vmem>>, vector<1x128xf32>
    %13 = vector.broadcast %12 : vector<1x128xf32> to vector<8x128xf32>
    %14 = arith.addf %11, %13 : vector<8x128xf32>
    %c0_11 = arith.constant 0 : index
    %c0_12 = arith.constant 0 : index
    %15 = vector.load %arg6[%c0_11, %c0_12] : memref<8x128xf32, #tpu.memory_space<vmem>>, vector<8x128xf32>
    tpu.vector_store %arg6[%c0_11, %c0_12], %14 {strides = array<i32>} : memref<8x128xf32, #tpu.memory_space<vmem>>, vector<8x128xf32>,
    return
  }
  func.func @transform_0(%arg0: i32) -> (i32, i32) {
    %c0_i32 = arith.constant 0 : i32
    %c0_i32_0 = arith.constant 0 : i32
    return %arg0, %c0_i32 : i32, i32
  }
  func.func @transform_1(%arg0: i32) -> (i32, i32) {
    %c0_i32 = arith.constant 0 : i32
    %c0_i32_0 = arith.constant 0 : i32
    %c0_i32_1 = arith.constant 0 : i32
    return %c0_i32, %c0_i32_0 : i32, i32
  }
  func.func @transform_2(%arg0: i32) -> (i32, i32) {
    %c0_i32 = arith.constant 0 : i32
    %c0_i32_0 = arith.constant 0 : i32
    %c0_i32_1 = arith.constant 0 : i32
    return %c0_i32, %c0_i32_0 : i32, i32
  }
  func.func @transform_3(%arg0: i32) -> (i32, i32) {
    %c0_i32 = arith.constant 0 : i32
    %c0_i32_0 = arith.constant 0 : i32
    %c0_i32_1 = arith.constant 0 : i32
    return %c0_i32, %c0_i32_0 : i32, i32
  }
  func.func @transform_4(%arg0: i32) -> (i32, i32) {
    %c0_i32 = arith.constant 0 : i32
    %c0_i32_0 = arith.constant 0 : i32
    %c0_i32_1 = arith.constant 0 : i32
    return %c0_i32, %c0_i32_0 : i32, i32
  }
  func.func @transform_5(%arg0: i32) -> (i32, i32) {
    %c0_i32 = arith.constant 0 : i32
    %c0_i32_0 = arith.constant 0 : i32
    return %arg0, %c0_i32 : i32, i32
  }
}

</mosaic_0001>

<bundles_post_ra>
// kernel: tpu_custom_call.1
= control target key start
LH: loop header
LB: loop body
LE: loop exit
PB: predicated region body
PF: predicated region fallthrough
CT: control target
= control target key end

     0   :  { %10 = vsyncpa [#allocation3], 0  ;;  %s1280_s0 = inlined_call_operand.hbm [shape: f32[2,784], index: 0, kind: input, shape index: {}]   ;;  %s1281_s1 = inlined_call_operand.hbm [shape: bf16[784,128], index: 1, kind: input, shape index: {}]   ;;  %s1282_s2 = inlined_call_operand.vmem [shape: f32[1,128], index: 2, kind: input, shape index: {}]   ;;  %s1283_s3 = inlined_call_operand.hbm [shape: bf16[128,128], index: 3, kind: input, shape index: {}]   ;;  %s1284_s4 = inlined_call_operand.vmem [shape: f32[1,128], index: 4, kind: input, shape index: {}]   ;;  %s1285_s5 = inlined_call_operand.hbm [shape: f32[2,128], index: 5, kind: output, shape index: {}]  }
   0x1   :  { %11 = vsyncpa [#allocation6], 0 }
   0x2   :  { %12 = vsyncpa [#allocation4], 0 }
   0x3   :  { %17 = vsyncadd [#allocation3], 672  ;;  %s1190_s18 = smov [#allocation5]  }
   0x4   :  { %s30_s19 = sshll.u32 %s1190_s18, 4  ;;  %s31_s19 = int_to_ptr.vmem [resolvable:$true] %s30_s19 }
   0x5   :  { %s1112_s20 = scalar_lea.vmem %s31_s19, 6272  ;;  %p1117_p1 = scmp.lt.s32.totalorder %s31_s19, %s31_s19 }
   0x6   :  { %p1113_p0 = scmp.ne.s32.totalorder %s31_s19, %s1112_s20  ;;  %p1118_p2 = scmp.lt.s32.totalorder %s1112_s20, %s1112_s20 }
   0x8   :  { %p1119_p3 = por %p1118_p2, %p1117_p1 }
   0xa   :  { %p1120_p4 = pnand %p1119_p3, %p1113_p0 }
   0xc   :  { %1123 = shalt.err (!%p1120_p4)
}
   0xd   :  { %s1191_s21 = smov 64   ;;  %s1192_s22 = smov 4  }
   0xe   :  { %36 = dma.hbm_to_vmem [thread:$0]  %s1281_s1, 6272, %s31_s19, [#allocation6], %s1191_s21, %s1191_s21, %s1192_s22  }
   0xf   :  { %s1193_s25 = smov [#allocation2]  }
  0x10   :  { %s18_s26 = sshll.u32 %s1193_s25, 4  ;;  %s19_s26 = int_to_ptr.vmem [resolvable:$true] %s18_s26 }
  0x11   :  { %s1132_s27 = scalar_lea.vmem %s19_s26, 224  ;;  %s1136_s28 = scalar_lea.vmem %s19_s26, 896 }
  0x12   :  { %p1133_p5 = scmp.ne.s32.totalorder %s19_s26, %s1132_s27  ;;  %p1137_p6 = scmp.lt.s32.totalorder %s19_s26, %s19_s26 }
  0x13   :  { %p1138_p7 = scmp.lt.s32.totalorder %s1136_s28, %s1132_s27 }
  0x15   :  { %p1139_p8 = por %p1138_p7, %p1137_p6 }
  0x17   :  { %p1140_p9 = pnand %p1139_p8, %p1133_p5 }
  0x19   :  { %1143 = shalt.err (!%p1140_p9)
}
  0x1a   :  { %s1194_s29 = smov 224   ;;  %s1195_s30 = smov 14  }
  0x1b   :  { %24 = dma.hbm_to_vmem [thread:$0]  %s1280_s0, 224, %s19_s26, [#allocation3], %s1194_s29, %s1194_s29, %s1195_s30  }
  0x1c   :  { %s1196_s8 = smov [#allocation7]  }
  0x1d   :  { %s44_s9 = sshll.u32 %s1196_s8, 4  ;;  %s45_s9 = int_to_ptr.vmem [resolvable:$true] %s44_s9 }
  0x1e   :  { %s1152_s1 = scalar_lea.vmem %s45_s9, 1024  ;;  %p1157_p11 = scmp.lt.s32.totalorder %s45_s9, %s45_s9 }
  0x1f   :  { %p1153_p10 = scmp.ne.s32.totalorder %s45_s9, %s1152_s1  ;;  %p1158_p12 = scmp.lt.s32.totalorder %s1152_s1, %s1152_s1 }
  0x21   :  { %p1159_p13 = por %p1158_p12, %p1157_p11 }
  0x23   :  { %p1160_p0 = pnand %p1159_p13, %p1153_p10 }
  0x25   :  { %1163 = shalt.err (!%p1160_p0)
}
  0x26   :  { %50 = dma.hbm_to_vmem [thread:$0]  %s1283_s3, 1024, %s45_s9, [#allocation6], %s1191_s21, %s1191_s21, %s1192_s22  }
  0x27   :  { %1184 = dma.done.wait [#allocation3], 896  }
  0x28   :  { %1185 = vsyncadd [#allocation3], 4294966400 }
  0x29   :  { %1186 = dma.done.wait [#allocation6], 7296  }
  0x2a   :  { %1187 = vsyncadd [#allocation6], 4294960000  ;;  %v1035_v0 = vld [vmem:[#allocation5 + $0x78] sm:$0xff]   ;;  %v1039_v4 = vld [vmem:[#allocation5 + $0x70] sm:$0xff]   ;;  %v1197_v23 = vmov 1983009808   ;;  %v86_v25 = vlaneseq }
  0x2b   :  { %v1036_v1 = vld [vmem:[#allocation5 + $0x38] sm:$0xff]   ;;  %919 = vmatprep.subr.bf16.mxu0 %v1035_v0  ;;  %v1040_v5 = vld [vmem:[#allocation5 + $0x30] sm:$0xff]   ;;  %v1043_v8 = vld [vmem:[#allocation5 + $0x68] sm:$0xff]   ;;  %v84_v24 = vunpack.c.l.s4 %v1197_v23  ;;  %v1198_v47 = vmov 0.0   ;;  %vm1199_vm0 = vmmov 0   ;;  %vm563_vm1 = vcmask 130048  }
  0x2c   :  { %v1037_v2 = vld [vmem:[#allocation5 + $0xf8] sm:$0xff]   ;;  %920 = vmatpush3.bf16.msra.mxu0 %v1036_v1  ;;  %v1041_v6 = vld [vmem:[#allocation5 + $0xf0] sm:$0xff]   ;;  %v1044_v9 = vld [vmem:[#allocation5 + $0x28] sm:$0xff]   ;;  %v87_v31 = vshrl.u32 %v86_v25, 7 }
  0x2d   :  { %v1038_v3 = vld [vmem:[#allocation5 + $0xb8] sm:$0xff]   ;;  %941 = vmatprep.subr.bf16.mxu1 %v1037_v2  ;;  %921 = vmatprep.subr.bf16.mxu0 %v1039_v4  ;;  %v1042_v7 = vld [vmem:[#allocation5 + $0xb0] sm:$0xff]   ;;  %v1045_v10 = vld [vmem:[#allocation5 + $0xe8] sm:$0xff]   ;;  %v85_v30 = vunpack.c.0.s8 %v84_v24 }
  0x2e   :  { %942 = vmatpush3.bf16.msra.mxu1 %v1038_v3  ;;  %v1046_v11 = vld [vmem:[#allocation5 + $0xa8] sm:$0xff]   ;;  %v1047_v12 = vld [vmem:[#allocation5 + $0x60] sm:$0xff]   ;;  %v1051_v16 = vld [vmem:[#allocation5 + $0x58] sm:$0xff]  }
  0x2f   :  { %943 = vmatprep.subr.bf16.mxu1 %v1041_v6  ;;  %v1048_v13 = vld [vmem:[#allocation5 + $0x20] sm:$0xff]   ;;  %v1052_v17 = vld [vmem:[#allocation5 + $0x18] sm:$0xff]   ;;  %v1055_v20 = vld [vmem:[#allocation5 + $0x50] sm:$0xff]   ;;  %v1248_v36 = vsub.s32 %v85_v30, %v87_v31 }
  0x30   :  { %922 = vmatpush3.bf16.msra.mxu0 %v1040_v5  ;;  %v1049_v14 = vld [vmem:[#allocation5 + $0xe0] sm:$0xff]   ;;  %v1053_v18 = vld [vmem:[#allocation5 + $0xd8] sm:$0xff]   ;;  %v1056_v21 = vld [vmem:[#allocation5 + $0x10] sm:$0xff]  }
  0x31   :  { %923 = vmatprep.subr.bf16.mxu0 %v1043_v8  ;;  %v1050_v15 = vld [vmem:[#allocation5 + $0xa0] sm:$0xff]   ;;  %v1054_v19 = vld [vmem:[#allocation5 + $0x98] sm:$0xff]   ;;  %v1057_v22 = vld [vmem:[#allocation5 + $0xd0] sm:$0xff]  }
  0x32   :  { %944 = vmatpush3.bf16.msra.mxu1 %v1042_v7  ;;  %v1058_v26 = vld [vmem:[#allocation5 + $0x90] sm:$0xff]   ;;  %v1059_v27 = vld [vmem:[#allocation5 + $0x48] sm:$0xff]   ;;  %v1063_v33 = vld [vmem:[#allocation5 + $0x40] sm:$0xff]  }
  0x33   :  { %945 = vmatprep.subr.bf16.mxu1 %v1045_v10  ;;  %v1060_v28 = vld [vmem:[#allocation5 + $0x8] sm:$0xff]   ;;  %v1064_v34 = vld [vmem:[#allocation5] sm:$0xff]   ;;  %v1071_v42 = vld [vmem:[#allocation5 + $0x178] sm:$0xff]  }
  0x34   :  { %924 = vmatpush3.bf16.msra.mxu0 %v1044_v9  ;;  %v1061_v29 = vld [vmem:[#allocation5 + $0xc8] sm:$0xff]   ;;  %v1065_v35 = vld [vmem:[#allocation5 + $0xc0] sm:$0xff]   ;;  %v1074_v52 = vld [vmem:[#allocation5 + $0x138] sm:$0xff]  }
  0x35   :  { %925 = vmatprep.subr.bf16.mxu0 %v1047_v12  ;;  %v1062_v32 = vld [vmem:[#allocation5 + $0x88] sm:$0xff]   ;;  %v1068_v38 = vld [vmem:[#allocation2 + $0x1c] ss:$14 sps:$4 sm:$0xff]   ;;  %v1081_v63 = vld [vmem:[#allocation5 + $0x158] sm:$0xff]  }
  0x36   :  { %946 = vmatpush3.bf16.msra.mxu1 %v1046_v11  ;;  %v1066_v37 = vld [vmem:[#allocation2] ss:$14 sps:$4 sm:$0xff]   ;;  %v1070_v39 = vld [vmem:[#allocation5 + $0x80] sm:$0xff]   ;;  %v103_v41 = vrot.slane %v1068_v38, %v1248_v36  ;;  %v1072_v43 = vld [vmem:[#allocation2 + $0x4] ss:$14 sps:$4 sm:$0xff]  }
  0x37   :  { %947 = vmatprep.subr.bf16.mxu1 %v1049_v14  ;;  %v89_v40 = vrot.slane %v1066_v37, %v1248_v36  ;;  %v1073_v44 = vld [vmem:[#allocation2 + $0x20] ss:$14 sps:$4 sm:$0xff]   ;;  %v96_v48 = vrot.slane %v1072_v43, %v1248_v36  ;;  %v1079_v61 = vld [vmem:[#allocation5 + $0x160] sm:$0xff]   ;;  %v1093_v5 = vld [vmem:[#allocation2 + $0x24] ss:$14 sps:$4 sm:$0xff]  }
  0x38   :  { %926 = vmatpush3.bf16.msra.mxu0 %v1048_v13  ;;  %v110_v49 = vrot.slane %v1073_v44, %v1248_v36  ;;  %v1075_v55 = vld [vmem:[#allocation5 + $0x170] sm:$0xff]   ;;  %v1077_v59 = vld [vmem:[#allocation5 + $0x168] sm:$0xff]   ;;  %v1080_v62 = vld [vmem:[#allocation5 + $0x120] sm:$0xff]   ;;  %v139_v10 = vrot.slane %v1093_v5, %v1248_v36 }
  0x39   :  { %927 = vmatprep.subr.bf16.mxu0 %v1051_v16  ;;  %v112_v45 = vcombine.high %v89_v40, %v103_v41  ;;  %v111_v46 = vcombine.low %v89_v40, %v103_v41  ;;  %v1076_v58 = vld [vmem:[#allocation5 + $0x130] sm:$0xff]   ;;  %v1078_v60 = vld [vmem:[#allocation5 + $0x128] sm:$0xff]   ;;  %v1089_v0 = vld [vmem:[#allocation5 + $0x180] sm:$0xff]  }
  0x3a   :  { %948 = vmatpush3.bf16.msra.mxu1 %v1050_v15  ;;  %v114_v53 = vcombine.high %v96_v48, %v110_v49  ;;  %v113_v54 = vcombine.low %v96_v48, %v110_v49  ;;  %v1082_v1 = vld [vmem:[#allocation5 + $0x118] sm:$0xff]   ;;  %v1092_v3 = vld [vmem:[#allocation2 + $0xc] ss:$14 sps:$4 sm:$0x33]   ;;  %v1085_v12 = vld [vmem:[#allocation5 + $0x148] sm:$0xff]  }
  0x3b   :  { %949 = vmatprep.subr.bf16.mxu1 %v1053_v18  ;;  %v158_v50 = vpack.c.bf16 %v112_v45, %v112_v45  ;;  %v157_v51 = vpack.c.bf16 %v111_v46, %v111_v46  ;;  %v1090_v2 = vld [vmem:[#allocation2 + $0x8] ss:$14 sps:$4 sm:$0xff]   ;;  %v132_v8 = vrot.slane %v1092_v3, %v1248_v36  ;;  %v1099_v25 = vld [vmem:[#allocation7 + $0x20] sm:$0xff]  }
  0x3c   :  { %928 = vmatpush3.bf16.msra.mxu0 %v1052_v17  ;;  %v160_v56 = vpack.c.bf16 %v114_v53, %v114_v53  ;;  %v159_v57 = vpack.c.bf16 %v113_v54, %v113_v54  ;;  %v1083_v4 = vld [vmem:[#allocation5 + $0x150] sm:$0xff]   ;;  %v125_v7 = vrot.slane %v1090_v2, %v1248_v36  ;;  %v1086_v17 = vld [vmem:[#allocation5 + $0x108] sm:$0xff]   ;;  %v1087_v18 = vld [vmem:[#allocation5 + $0x140] sm:$0xff]  }
  0x3d   :  { %929 = vmatprep.subr.bf16.mxu0 %v1055_v20  ;;  %599 = vmatprep.mubr.bf16.mxu0 %v158_v50  ;;  %v1095_v6 = vld [vmem:[#allocation2 + $0x28] ss:$14 sps:$4 sm:$0x33]   ;;  %v1088_v20 = vld [vmem:[#allocation5 + $0x100] sm:$0xff]  }
  0x3e   :  { %950 = vmatpush3.bf16.msra.mxu1 %v1054_v19  ;;  %639 = vmatprep.mubr.bf16.mxu1 %v160_v56  ;;  %v1084_v9 = vld [vmem:[#allocation5 + $0x110] sm:$0xff]   ;;  %v146_v11 = vrot.slane %v1095_v6, %v1248_v36  ;;  %v148_v13 = vcombine.high %v125_v7, %v139_v10  ;;  %v147_v19 = vcombine.low %v125_v7, %v139_v10  ;;  %v1097_v23 = vld [vmem:[#allocation7 + $0x30] sm:$0xff]   ;;  %v910_v56 = vld [vmem:[%s1284_s4] ss:$0 sm:$0xff] }
  0x3f   :  { %951 = vmatprep.subr.bf16.mxu1 %v1057_v22  ;;  %v1096_v22 = vld [vmem:[#allocation7 + $0x38] sm:$0xff]   ;;  %v1098_v24 = vld [vmem:[#allocation7 + $0x28] sm:$0xff]  }
  0x40   :  { %930 = vmatpush3.bf16.msra.mxu0 %v1056_v21  ;;  %v149_v14 = vcombine.low %v132_v8, %v146_v11  ;;  %v162_v15 = vpack.c.bf16 %v148_v13, %v148_v13  ;;  %v161_v21 = vpack.c.bf16 %v147_v19, %v147_v19 }
  0x41   :  { %931 = vmatprep.subr.bf16.mxu0 %v1059_v27  ;;  %v1101_v27 = vld [vmem:[#allocation7 + $0x10] sm:$0xff]  }
  0x42   :  { %952 = vmatpush3.bf16.msra.mxu1 %v1058_v26  ;;  %v163_v16 = vpack.c.bf16 %v149_v14, %v149_v14  ;;  %v1100_v26 = vld [vmem:[#allocation7 + $0x18] sm:$0xff]  }
  0x43   :  { %953 = vmatprep.subr.bf16.mxu1 %v1061_v29  ;;  %v1103_v29 = vld [vmem:[#allocation7] sm:$0xff]  }
  0x44   :  { %932 = vmatpush3.bf16.msra.mxu0 %v1060_v28  ;;  %v1102_v28 = vld [vmem:[#allocation7 + $0x8] sm:$0xff]  }
  0x45   :  { %933 = vmatprep.subr.bf16.mxu0 %v1063_v33 }
  0x46   :  { %954 = vmatpush3.bf16.msra.mxu1 %v1062_v32 }
  0x47   :  { %955 = vmatprep.subr.bf16.mxu1 %v1065_v35 }
  0x48   :  { %934 = vmatpush3.bf16.msra.mxu0 %v1064_v34 }
  0x49   :  { %963 = vmatprep.subr.bf16.mxu0 %v1071_v42  ;;  %v859_v42 = vld [vmem:[%s1282_s2] ss:$0 sm:$0xff] }
  0x4a   :  { %956 = vmatpush3.bf16.msra.mxu1 %v1070_v39 }
  0x4b   :  { %996 = vmatprep.subr.bf16.mxu1 %v1198_v47  ;;  %600 = vmatmul.mubr.bf16.vlgmr.msra.gmra.mxu0 %v157_v51 }
  0x4c   :  { %964 = vmatpush3.bf16.msra.mxu0 %v1074_v52  ;;  %679 = vmatprep.mubr.bf16.mxu0 %v162_v15 }
  0x4d   :  { %965 = vmatprep.subr.bf16.mxu0 %v1075_v55  ;;  %640 = vmatmul.mubr.bf16.vlgmr.msra.gmra.mxu1 %v159_v57 }
  0x4e   :  { %998 = vmatprep.mubr.msk.bf16.mxu1 %vm1199_vm0, %v1198_v47  ;;  %997 = vmatpush3.bf16.msra.mxu1 %v1089_v0 }
  0x4f   :  { %1002 = vmatprep.subr.bf16.mxu1 %v1198_v47 }
  0x50   :  { %966 = vmatpush3.bf16.msra.mxu0 %v1076_v58 }
  0x51   :  { %967 = vmatprep.subr.bf16.mxu0 %v1077_v59 }
  0x54   :  { %968 = vmatpush3.bf16.msra.mxu0 %v1078_v60 }
  0x55   :  { %969 = vmatprep.subr.bf16.mxu0 %v1079_v61  ;;  %999 = vmatmul.mubr.msk.bf16.vlgmr.msra.gmra.mxu1 %vm563_vm1, %v163_v16 }
  0x56   :  { %1018 = vmatprep.mubr.msk.bf16.mxu1 %vm1199_vm0, %v1198_v47  ;;  %1003 = vmatpush3.bf16.msra.mxu1 %v1096_v22 }
  0x57   :  { %1004 = vmatprep.subr.bf16.mxu1 %v1198_v47 }
  0x58   :  { %970 = vmatpush3.bf16.msra.mxu0 %v1080_v62 }
  0x59   :  { %971 = vmatprep.subr.bf16.mxu0 %v1081_v63 }
  0x5a   :  { %1005 = vmatpush3.bf16.msra.mxu1 %v1097_v23 }
  0x5b   :  { %1006 = vmatprep.subr.bf16.mxu1 %v1198_v47 }
  0x5c   :  { %972 = vmatpush3.bf16.msra.mxu0 %v1082_v1 }
  0x5d   :  { %973 = vmatprep.subr.bf16.mxu0 %v1083_v4 }
  0x5e   :  { %1007 = vmatpush3.bf16.msra.mxu1 %v1098_v24 }
  0x5f   :  { %1008 = vmatprep.subr.bf16.mxu1 %v1198_v47 }
  0x60   :  { %974 = vmatpush3.bf16.msra.mxu0 %v1084_v9 }
  0x61   :  { %975 = vmatprep.subr.bf16.mxu0 %v1085_v12 }
  0x62   :  { %1009 = vmatpush3.bf16.msra.mxu1 %v1099_v25 }
  0x63   :  { %1010 = vmatprep.subr.bf16.mxu1 %v1198_v47 }
  0x64   :  { %976 = vmatpush3.bf16.msra.mxu0 %v1086_v17 }
  0x65   :  { %977 = vmatprep.subr.bf16.mxu0 %v1087_v18 }
  0x66   :  { %1011 = vmatpush3.bf16.msra.mxu1 %v1100_v26 }
  0x67   :  { %1012 = vmatprep.subr.bf16.mxu1 %v1198_v47 }
  0x68   :  { %978 = vmatpush3.bf16.msra.mxu0 %v1088_v20 }
  0x6a   :  { %1013 = vmatpush3.bf16.msra.mxu1 %v1101_v27 }
  0x6b   :  { %680 = vmatmul.mubr.bf16.vlgmr.msra.gmra.mxu0 %v161_v21  ;;  %1014 = vmatprep.subr.bf16.mxu1 %v1198_v47 }
  0x6e   :  { %1015 = vmatpush3.bf16.msra.mxu1 %v1102_v28 }
  0x6f   :  { %1016 = vmatprep.subr.bf16.mxu1 %v1198_v47 }
  0x72   :  { %1017 = vmatpush3.bf16.msra.mxu1 %v1103_v29 }
 0x10b   :  { %v935_v30 = vpop.f32.mrf.mxu0 }
 0x10d   :  { %v936_v31 = vpop.f32.mrf.mxu0  ;;  %v957_v32 = vpop.f32.mrf.mxu1 }
 0x10e   :  { %v937_v41 = vadd.f32 %v936_v31, %v935_v30 }
 0x10f   :  { %v938_v33 = vpop.f32.mrf.mxu0  ;;  %v958_v34 = vpop.f32.mrf.mxu1 }
 0x110   :  { %v602_v44 = vadd.f32 %v937_v41, %v859_v42  ;;  %v959_v45 = vadd.f32 %v958_v34, %v957_v32 }
 0x111   :  { %v939_v35 = vpop.f32.mrf.mxu0  ;;  %v960_v36 = vpop.f32.mrf.mxu1 }
 0x112   :  { %v642_v48 = vadd.f32 %v959_v45, %v602_v44 }
 0x113   :  { %v961_v37 = vpop.f32.mrf.mxu1 }
 0x115   :  { %v721_v38 = vpop.f32.mrf.mxu1 }
 0x117   :  { %v1000_v39 = vpop.f32.mrf.mxu1 }
 0x119   :  { %v724_v40 = vpop.f32.mrf.mxu1 }
 0x11b   :  { %v1001_v43 = vpop.f32.mrf.mxu1 }
 0x12b   :  { %v979_v46 = vpop.f32.mrf.mxu0 }
 0x12d   :  { %v980_v47 = vpop.f32.mrf.mxu0 }
 0x12e   :  { %v981_v49 = vadd.f32 %v980_v47, %v979_v46 }
 0x12f   :  { %v982_v50 = vpop.f32.mrf.mxu0 }
 0x130   :  { %v682_v51 = vadd.f32 %v981_v49, %v642_v48 }
 0x131   :  { %v983_v52 = vpop.f32.mrf.mxu0 }
 0x132   :  { %v722_v53 = vadd.f32 %v721_v38, %v682_v51 }
 0x134   :  { %v727_v54 = vmax.f32 %v722_v53, 0.0 }
 0x136   :  { %v728_v55 = vpack.c.bf16 %v727_v54, %v727_v54 }
 0x138   :  { %1019 = vmatmul.mubr.bf16.vlgmr.msra.gmra.mxu1 %v728_v55 }
 0x1f8   :  { %v834_v57 = vpop.f32.mrf.mxu1 }
 0x1f9   :  { %v835_v58 = vadd.f32 %v910_v56, %v834_v57 }
 0x1fa   :  { %v1020_v59 = vpop.f32.mrf.mxu1 }
 0x1fb   :  { %840 = vst [vmem:[#allocation8] sm:$0xff] %v835_v58 }
 0x1fc   :  { %v837_v60 = vpop.f32.mrf.mxu1 }
 0x1fe   :  { %v1021_v61 = vpop.f32.mrf.mxu1 }
 0x1ff   :  { %845 = vsyncadd [#allocation4], 96  ;;  %s1200_s2 = smov [#allocation8]  }
 0x200   :  { %s846_s14 = sshll.u32 %s1200_s2, 4  ;;  %s847_s14 = int_to_ptr.vmem [resolvable:$true] %s846_s14 }
 0x201   :  { %s1164_s15 = scalar_lea.vmem %s847_s14, 32  ;;  %s1168_s16 = scalar_lea.vmem %s847_s14, 128 }
 0x202   :  { %p1165_p1 = scmp.ne.s32.totalorder %s847_s14, %s1164_s15  ;;  %p1169_p2 = scmp.lt.s32.totalorder %s847_s14, %s847_s14 }
 0x203   :  { %p1170_p3 = scmp.lt.s32.totalorder %s1168_s16, %s1164_s15 }
 0x205   :  { %p1171_p4 = por %p1170_p3, %p1169_p2 }
 0x207   :  { %p1172_p5 = pnand %p1171_p4, %p1165_p1 }
 0x209   :  { %1175 = shalt.err (!%p1172_p5)
}
 0x20a   :  { %s1201_s17 = smov 32   ;;  %s1202_s4 = smov 2  }
 0x20b   :  { %852 = dma.vmem_to_hbm [thread:$0]  %s847_s14, 32, %s1285_s5, [#allocation4], %s1201_s17, %s1201_s17, %s1202_s4  }
 0x20c   :  { %1188 = dma.done.wait [#allocation4], 128  }
 0x20d   :  { %1189 = vsyncadd [#allocation4], 4294967168 }
 0x20e   :  { %856 = vsyncpa [#allocation3], 1 }
 0x20f   :  { %857 = vsyncpa [#allocation6], 1 }
 0x210   :  { %858 = vsyncpa [#allocation4], 1 }

</bundles_post_ra>
